<compile_context>
chip_gen: v5e
topology: v5e:2x2
jax: 0.10.0
libtpu: 0.0.40
codegen_flags: <defaults>
</compile_context>

<pallas_src>
import math

import jax
import jax.numpy as jnp
import numpy as np
from jax import lax
from jax.experimental import pallas as pl
from jax.experimental.pallas import tpu as pltpu


def _round_up(x, m):
    return ((x + m - 1) // m) * m


def _make_resblock_kernel(L, M_tile, matmul_dtype):
    """Kernel for one block of whole sequences; M_tile = B_tile * L rows."""
    pow2 = (L & (L - 1)) == 0

    def kernel(x_ref, w1_ref, b1_ref, w2_ref, b2_ref, out_ref):
        # x_ref  : (M_tile, C_in)   channels-last input rows (matmul_dtype)
        # w1_ref : (3, C_in, F)     conv1 weights, one (C_in, F) slab per tap
        # b1_ref : (1, F)           f32
        # w2_ref : (3*F, F_pad)     conv2 weights, tap-major rows, lane-padded cols
        # b2_ref : (1, F_pad)       f32 (zero in padded lanes)
        # out_ref: (M_tile, F_pad)  relu(conv2(relu(conv1(x)))), lane-dense

        x_in = x_ref[...]                          # matmul_dtype
        x32 = x_in.astype(jnp.float32)

        # O(1) sequence-boundary masks (covers roll wrap-around AND the
        # boundaries between the B_tile sequences packed into this block).
        pos = lax.broadcasted_iota(jnp.int32, (M_tile, 1), 0)
        pos_in_seq = (pos & (L - 1)) if pow2 else lax.rem(pos, L)
        is_first = pos_in_seq == 0
        is_last = pos_in_seq == (L - 1)

        # ---- conv1: taps built in-register (roll = XLU slot, ~free) ----
        xl = jnp.where(is_first, 0.0, pltpu.roll(x32, shift=1, axis=0))
        xr = jnp.where(is_last, 0.0, pltpu.roll(x32, shift=M_tile - 1, axis=0))
        # Sum of 3 tap matmuls == the single (M, 3*C_in) im2col matmul, without
        # an unaligned lane concat of C_in-wide pieces; f32 accumulation.
        h1 = jnp.dot(xl.astype(matmul_dtype), w1_ref[0],
                     preferred_element_type=jnp.float32)
        h1 = h1 + jnp.dot(x_in, w1_ref[1], preferred_element_type=jnp.float32)
        h1 = h1 + jnp.dot(xr.astype(matmul_dtype), w1_ref[2],
                          preferred_element_type=jnp.float32)
        h1 = jnp.maximum(h1 + b1_ref[...], 0.0)              # (M_tile, F) f32

        # ---- conv2: in-register im2col, single MXU matmul, lane-dense out ----
        left = jnp.where(is_first, 0.0, pltpu.roll(h1, shift=1, axis=0))
        right = jnp.where(is_last, 0.0, pltpu.roll(h1, shift=M_tile - 1, axis=0))
        x2 = jnp.concatenate([left, h1, right], axis=-1)      # (M_tile, 3*F)
        h2 = jnp.dot(x2.astype(matmul_dtype), w2_ref[...],
                     preferred_element_type=jnp.float32)      # (M_tile, F_pad)
        out_ref[...] = jnp.maximum(h2 + b2_ref[...], 0.0)     # unmasked stores

    return kernel


def residual_block(x_ncl, w1, b1, w2, b2, *,
                   matmul_dtype=jnp.bfloat16,
                   target_rows=1024,
                   vmem_budget_bytes=12 * 1024 * 1024):
    """x_ncl: (N, C_in, L) f32 (PyTorch Conv1d layout).
    w1: (F, C_in, 3), b1: (F,), w2: (F, F, 3), b2: (F,)  (PyTorch Conv1d weights).
    Returns (N, F + C_in, L) f32 == torch.cat((relu(conv2(relu(conv1(x)))), x), 1).

    matmul_dtype=bfloat16 (default) feeds the MXU its native input type on
    v5e/v6e/v7x; accumulation, bias, ReLU and the residual stay f32.  Pass
    jnp.float32 for bit-strict conv inputs."""
    N, C_in, L = x_ncl.shape
    F = w1.shape[0]
    F_pad = _round_up(F, 128)                   # lane-dense output (unmasked vst)
    in_item = jnp.dtype(matmul_dtype).itemsize

    # ---- tile sizing: ~1K rows per grid step, capped by a VMEM budget that is
    # comfortably below every generation's scoped default (v5e 16 MiB,
    # v6e/v7x 32 MiB); v7x's smaller 64 MiB physical VMEM is therefore safe
    # without raising vmem_limit_bytes. ----
    bytes_per_row = (2 * C_in * in_item                     # 2x-buffered input
                     + 2 * F_pad * 4                        # 2x-buffered output
                     + 4 * (3 * C_in + 5 * F + 3 * F + F_pad))  # live f32 temps
    rows_cap = max(L, vmem_budget_bytes // bytes_per_row)
    rows_tgt = max(L, min(target_rows, rows_cap))
    b_target = max(1, rows_tgt // L)

    grid_n = max(1, -(-N // b_target))                      # ceil
    B_tile = -(-N // grid_n)
    if grid_n > 1:
        # block rows (= B_tile * L) must be a multiple of 8 when not full-extent
        B_tile = _round_up(B_tile, 8 // math.gcd(L, 8))
        grid_n = -(-N // B_tile)
    N_pad = grid_n * B_tile
    M_tile = B_tile * L
    M_total = N_pad * L

    # ---- wrapper-side prep: channels-last only; taps are built in-kernel ----
    x_nlc = jnp.transpose(x_ncl, (0, 2, 1)).astype(jnp.float32)       # (N, L, C_in)
    x_b = x_nlc if N_pad == N else jnp.pad(x_nlc, ((0, N_pad - N), (0, 0), (0, 0)))
    x_flat = x_b.reshape(M_total, C_in).astype(matmul_dtype)

    # conv1 weights: (F, C_in, 3) -> (3, C_in, F), one (C_in, F) slab per tap
    w1_t = jnp.transpose(w1, (2, 1, 0)).astype(matmul_dtype)
    # conv2 weights: tap-major rows, output lanes zero-padded to F_pad
    w2col = jnp.transpose(w2, (2, 1, 0)).reshape(3 * F, F)
    w2col = jnp.pad(w2col, ((0, 0), (0, F_pad - F))).astype(matmul_dtype)
    b1r = b1.reshape(1, F).astype(jnp.float32)
    b2r = jnp.pad(b2, (0, F_pad - F)).reshape(1, F_pad).astype(jnp.float32)

    kernel = _make_resblock_kernel(L, M_tile, matmul_dtype)

    h2_flat = pl.pallas_call(
        kernel,
        out_shape=jax.ShapeDtypeStruct((M_total, F_pad), jnp.float32),
        grid_spec=pltpu.PrefetchScalarGridSpec(
            num_scalar_prefetch=0,
            grid=(grid_n,),
            in_specs=[
                pl.BlockSpec((M_tile, C_in), lambda i: (i, 0)),
                pl.BlockSpec((3, C_in, F), lambda i: (0, 0, 0)),
                pl.BlockSpec((1, F), lambda i: (0, 0)),
                pl.BlockSpec((3 * F, F_pad), lambda i: (0, 0)),
                pl.BlockSpec((1, F_pad), lambda i: (0, 0)),
            ],
            out_specs=pl.BlockSpec((M_tile, F_pad), lambda i: (i, 0)),
        ),
        compiler_params=pltpu.CompilerParams(
            dimension_semantics=("parallel",)),   # v7x: both TCs share the grid
    )(x_flat, w1_t, b1r, w2col, b2r)

    h2 = h2_flat[:, :F].reshape(N_pad, L, F)[:N]                      # (N, L, F)
    # Residual concat + NLC->NCL transpose stay as one fused XLA epilogue pass.
    # TODO(synk): if the consumer accepts channels-last, drop the final transpose
    # and alias the residual into a preallocated (N, L, F+C_in) buffer.
    out_nlc = jnp.concatenate([h2, x_nlc], axis=-1)                   # (N, L, F+C_in)
    return jnp.transpose(out_nlc, (0, 2, 1))                          # (N, F+C_in, L)


def _reference(x_ncl, w1, b1, w2, b2):
    """Pure-JAX reference mirroring the PyTorch forward (NCL conv1d)."""
    dn = lax.conv_dimension_numbers(x_ncl.shape, w1.shape, ("NCH", "OIH", "NCH"))
    h1 = lax.conv_general_dilated(x_ncl, w1, (1,), [(1, 1)], dimension_numbers=dn)
    h1 = jnp.maximum(h1 + b1[None, :, None], 0.0)
    dn2 = lax.conv_dimension_numbers(h1.shape, w2.shape, ("NCH", "OIH", "NCH"))
    h2 = lax.conv_general_dilated(h1, w2, (1,), [(1, 1)], dimension_numbers=dn2)
    h2 = jnp.maximum(h2 + b2[None, :, None], 0.0)
    return jnp.concatenate([h2, x_ncl], axis=1)


if __name__ == "__main__":
    N, C_in, L, F = 2, 21, 16, 32

    key = jax.random.PRNGKey(0)
    kx, kw1, kb1, kw2, kb2 = jax.random.split(key, 5)

    x = jax.random.normal(kx, (N, C_in, L), dtype=jnp.float32)
    # PyTorch Conv1d weight layout: (out_channels, in_channels, kernel_size)
    w1 = jax.random.normal(kw1, (F, C_in, 3), dtype=jnp.float32) * 0.1
    b1 = jax.random.normal(kb1, (F,), dtype=jnp.float32) * 0.1
    w2 = jax.random.normal(kw2, (F, F, 3), dtype=jnp.float32) * 0.1
    b2 = jax.random.normal(kb2, (F,), dtype=jnp.float32) * 0.1

    ref = jax.block_until_ready(_reference(x, w1, b1, w2, b2))

    # Bit-strict check with f32 MXU inputs.
    out_f32 = jax.block_until_ready(
        residual_block(x, w1, b1, w2, b2, matmul_dtype=jnp.float32))
    np.testing.assert_allclose(np.asarray(out_f32), np.asarray(ref),
                               rtol=1e-5, atol=1e-5)
    assert out_f32.shape == (N, F + C_in, L)

    # Default path: bf16 MXU inputs (f32 accumulation / bias / ReLU / residual);
    # only input-rounding error is expected, so the tolerance is loose.
    out_bf16 = jax.block_until_ready(residual_block(x, w1, b1, w2, b2))
    np.testing.assert_allclose(np.asarray(out_bf16), np.asarray(ref),
                               rtol=1e-1, atol=1e-1)
    assert out_bf16.shape == (N, F + C_in, L)

    print("KERNEL_OK")
</pallas_src>

<mosaic_0001>
module attributes {stable_mosaic.version = 11 : i64} {
  func.func @kernel(%arg0: i32, %arg1: memref<32x21xf32, #tpu.memory_space<vmem>>, %arg2: memref<3x21x32xf32, #tpu.memory_space<vmem>>, %arg3: memref<1x32xf32, #tpu.memory_space<vmem>>, %arg4: memref<96x128xf32, #tpu.memory_space<vmem>>, %arg5: memref<1x128xf32, #tpu.memory_space<vmem>>, %arg6: memref<32x128xf32, #tpu.memory_space<vmem>>) attributes {dimension_semantics = [#tpu.dimension_semantics<parallel>], iteration_bounds = array<i64: 1>, scalar_prefetch = 0 : i64, scratch_operands = 0 : i64, tpu.core_type = #tpu.core_type<tc>, window_params = [{transform_indices = @transform_0, window_bounds = array<i64: 32, 21>}, {pipeline_mode = #tpu.pipeline_mode<synchronous>, transform_indices = @transform_1, window_bounds = array<i64: 3, 21, 32>}, {pipeline_mode = #tpu.pipeline_mode<synchronous>, transform_indices = @transform_2, window_bounds = array<i64: 1, 32>}, {pipeline_mode = #tpu.pipeline_mode<synchronous>, transform_indices = @transform_3, window_bounds = array<i64: 96, 128>}, {pipeline_mode = #tpu.pipeline_mode<synchronous>, transform_indices = @transform_4, window_bounds = array<i64: 1, 128>}, {transform_indices = @transform_5, window_bounds = array<i64: 32, 128>}]} {
    %c0 = arith.constant 0 : index
    %c0_0 = arith.constant 0 : index
    %0 = vector.load %arg1[%c0, %c0_0] : memref<32x21xf32, #tpu.memory_space<vmem>>, vector<32x21xf32>
    %1 = tpu.iota {dimensions = array<i32: 0>} : vector<32x1xi32>
    %c15_i32 = arith.constant 15 : i32
    %2 = vector.broadcast %c15_i32 : i32 to vector<32x1xi32>
    %3 = arith.andi %1, %2 : vector<32x1xi32>
    %c0_i32 = arith.constant 0 : i32
    %4 = vector.broadcast %c0_i32 : i32 to vector<32x1xi32>
    %5 = arith.cmpi eq, %3, %4 : vector<32x1xi32>
    %c15_i32_1 = arith.constant 15 : i32
    %6 = vector.broadcast %c15_i32_1 : i32 to vector<32x1xi32>
    %7 = arith.cmpi eq, %3, %6 : vector<32x1xi32>
    %c1_i32 = arith.constant 1 : i32
    %8 = tpu.dynamic_rotate %0 by %c1_i32 dim 0 : vector<32x21xf32>, i32 -> vector<32x21xf32>
    %cst = arith.constant 0.000000e+00 : f32
    %9 = vector.shape_cast %5 : vector<32x1xi1> to vector<32x1xi1>
    %10 = vector.broadcast %9 : vector<32x1xi1> to vector<32x21xi1>
    %11 = vector.broadcast %cst : f32 to vector<32x21xf32>
    %12 = arith.select %10, %11, %8 : vector<32x21xi1>, vector<32x21xf32>
    %c31_i32 = arith.constant 31 : i32
    %13 = tpu.dynamic_rotate %0 by %c31_i32 dim 0 : vector<32x21xf32>, i32 -> vector<32x21xf32>
    %cst_2 = arith.constant 0.000000e+00 : f32
    %14 = vector.shape_cast %7 : vector<32x1xi1> to vector<32x1xi1>
    %15 = vector.broadcast %14 : vector<32x1xi1> to vector<32x21xi1>
    %16 = vector.broadcast %cst_2 : f32 to vector<32x21xf32>
    %17 = arith.select %15, %16, %13 : vector<32x21xi1>, vector<32x21xf32>
    %c0_3 = arith.constant 0 : index
    %c0_4 = arith.constant 0 : index
    %c0_5 = arith.constant 0 : index
    %18 = vector.load %arg2[%c0_3, %c0_4, %c0_5] : memref<3x21x32xf32, #tpu.memory_space<vmem>>, vector<1x21x32xf32>
    %19 = vector.shape_cast %18 : vector<1x21x32xf32> to vector<21x32xf32>
    %cst_6 = arith.constant dense<0.000000e+00> : vector<32x32xf32>
    %20 = tpu.matmul %12, %19, %cst_6 {dimension_numbers = #tpu.dot_dimension_numbers<[1], [0], [0], [1], [0, 0, 1, 1], [], []>} : vector<32x21xf32>, vector<21x32xf32>, vector<32x32xf32> -> vector<32x32xf32>
    %c1 = arith.constant 1 : index
    %c0_7 = arith.constant 0 : index
    %c0_8 = arith.constant 0 : index
    %21 = vector.load %arg2[%c1, %c0_7, %c0_8] : memref<3x21x32xf32, #tpu.memory_space<vmem>>, vector<1x21x32xf32>
    %22 = vector.shape_cast %21 : vector<1x21x32xf32> to vector<21x32xf32>
    %cst_9 = arith.constant dense<0.000000e+00> : vector<32x32xf32>
    %23 = tpu.matmul %0, %22, %cst_9 {dimension_numbers = #tpu.dot_dimension_numbers<[1], [0], [0], [1], [0, 0, 1, 1], [], []>} : vector<32x21xf32>, vector<21x32xf32>, vector<32x32xf32> -> vector<32x32xf32>
    %24 = arith.addf %20, %23 : vector<32x32xf32>
    %c2 = arith.constant 2 : index
    %c0_10 = arith.constant 0 : index
    %c0_11 = arith.constant 0 : index
    %25 = vector.load %arg2[%c2, %c0_10, %c0_11] : memref<3x21x32xf32, #tpu.memory_space<vmem>>, vector<1x21x32xf32>
    %26 = vector.shape_cast %25 : vector<1x21x32xf32> to vector<21x32xf32>
    %cst_12 = arith.constant dense<0.000000e+00> : vector<32x32xf32>
    %27 = tpu.matmul %17, %26, %cst_12 {dimension_numbers = #tpu.dot_dimension_numbers<[1], [0], [0], [1], [0, 0, 1, 1], [], []>} : vector<32x21xf32>, vector<21x32xf32>, vector<32x32xf32> -> vector<32x32xf32>
    %28 = arith.addf %24, %27 : vector<32x32xf32>
    %c0_13 = arith.constant 0 : index
    %c0_14 = arith.constant 0 : index
    %29 = vector.load %arg3[%c0_13, %c0_14] : memref<1x32xf32, #tpu.memory_space<vmem>>, vector<1x32xf32>
    %30 = vector.broadcast %29 : vector<1x32xf32> to vector<32x32xf32>
    %31 = arith.addf %28, %30 : vector<32x32xf32>
    %cst_15 = arith.constant 0.000000e+00 : f32
    %32 = vector.broadcast %cst_15 : f32 to vector<32x32xf32>
    %33 = arith.maximumf %31, %32 : vector<32x32xf32>
    %c1_i32_16 = arith.constant 1 : i32
    %34 = tpu.dynamic_rotate %33 by %c1_i32_16 dim 0 : vector<32x32xf32>, i32 -> vector<32x32xf32>
    %cst_17 = arith.constant 0.000000e+00 : f32
    %35 = vector.shape_cast %5 : vector<32x1xi1> to vector<32x1xi1>
    %36 = vector.broadcast %35 : vector<32x1xi1> to vector<32x32xi1>
    %37 = vector.broadcast %cst_17 : f32 to vector<32x32xf32>
    %38 = arith.select %36, %37, %34 : vector<32x32xi1>, vector<32x32xf32>
    %c31_i32_18 = arith.constant 31 : i32
    %39 = tpu.dynamic_rotate %33 by %c31_i32_18 dim 0 : vector<32x32xf32>, i32 -> vector<32x32xf32>
    %cst_19 = arith.constant 0.000000e+00 : f32
    %40 = vector.shape_cast %7 : vector<32x1xi1> to vector<32x1xi1>
    %41 = vector.broadcast %40 : vector<32x1xi1> to vector<32x32xi1>
    %42 = vector.broadcast %cst_19 : f32 to vector<32x32xf32>
    %43 = arith.select %41, %42, %39 : vector<32x32xi1>, vector<32x32xf32>
    %44 = tpu.concatenate %38, %33, %43 in 1 : vector<32x32xf32>, vector<32x32xf32>, vector<32x32xf32> -> vector<32x96xf32>
    %c0_20 = arith.constant 0 : index
    %c0_21 = arith.constant 0 : index
    %45 = vector.load %arg4[%c0_20, %c0_21] : memref<96x128xf32, #tpu.memory_space<vmem>>, vector<96x128xf32>
    %cst_22 = arith.constant dense<0.000000e+00> : vector<32x128xf32>
    %46 = tpu.matmul %44, %45, %cst_22 {dimension_numbers = #tpu.dot_dimension_numbers<[1], [0], [0], [1], [0, 0, 1, 1], [], []>} : vector<32x96xf32>, vector<96x128xf32>, vector<32x128xf32> -> vector<32x128xf32>
    %c0_23 = arith.constant 0 : index
    %c0_24 = arith.constant 0 : index
    %47 = vector.load %arg5[%c0_23, %c0_24] : memref<1x128xf32, #tpu.memory_space<vmem>>, vector<1x128xf32>
    %48 = vector.broadcast %47 : vector<1x128xf32> to vector<32x128xf32>
    %49 = arith.addf %46, %48 : vector<32x128xf32>
    %cst_25 = arith.constant 0.000000e+00 : f32
    %50 = vector.broadcast %cst_25 : f32 to vector<32x128xf32>
    %51 = arith.maximumf %49, %50 : vector<32x128xf32>
    %c0_26 = arith.constant 0 : index
    %c0_27 = arith.constant 0 : index
    %52 = vector.load %arg6[%c0_26, %c0_27] : memref<32x128xf32, #tpu.memory_space<vmem>>, vector<32x128xf32>
    tpu.vector_store %arg6[%c0_26, %c0_27], %51 {strides = array<i32>} : memref<32x128xf32, #tpu.memory_space<vmem>>, vector<32x128xf32>,
    return
  }
  func.func @transform_0(%arg0: i32) -> (i32, i32) {
    %c0_i32 = arith.constant 0 : i32
    %c0_i32_0 = arith.constant 0 : i32
    return %arg0, %c0_i32 : i32, i32
  }
  func.func @transform_1(%arg0: i32) -> (i32, i32, i32) {
    %c0_i32 = arith.constant 0 : i32
    %c0_i32_0 = arith.constant 0 : i32
    %c0_i32_1 = arith.constant 0 : i32
    %c0_i32_2 = arith.constant 0 : i32
    return %c0_i32, %c0_i32_0, %c0_i32_1 : i32, i32, i32
  }
  func.func @transform_2(%arg0: i32) -> (i32, i32) {
    %c0_i32 = arith.constant 0 : i32
    %c0_i32_0 = arith.constant 0 : i32
    %c0_i32_1 = arith.constant 0 : i32
    return %c0_i32, %c0_i32_0 : i32, i32
  }
  func.func @transform_3(%arg0: i32) -> (i32, i32) {
    %c0_i32 = arith.constant 0 : i32
    %c0_i32_0 = arith.constant 0 : i32
    %c0_i32_1 = arith.constant 0 : i32
    return %c0_i32, %c0_i32_0 : i32, i32
  }
  func.func @transform_4(%arg0: i32) -> (i32, i32) {
    %c0_i32 = arith.constant 0 : i32
    %c0_i32_0 = arith.constant 0 : i32
    %c0_i32_1 = arith.constant 0 : i32
    return %c0_i32, %c0_i32_0 : i32, i32
  }
  func.func @transform_5(%arg0: i32) -> (i32, i32) {
    %c0_i32 = arith.constant 0 : i32
    %c0_i32_0 = arith.constant 0 : i32
    return %arg0, %c0_i32 : i32, i32
  }
}

</mosaic_0001>

<bundles_post_ra>
// kernel: tpu_custom_call.1
= control target key start
LH: loop header
LB: loop body
LE: loop exit
PB: predicated region body
PF: predicated region fallthrough
CT: control target
= control target key end

     0   :  { %10 = vsyncpa [#allocation3], 0  ;;  %s729_s0 = inlined_call_operand.vmem [shape: f32[32,21], index: 0, kind: input, shape index: {}]   ;;  %s730_s1 = inlined_call_operand.hbm [shape: f32[3,21,32], index: 1, kind: input, shape index: {}]   ;;  %s731_s2 = inlined_call_operand.vmem [shape: f32[1,32], index: 2, kind: input, shape index: {}]   ;;  %s732_s3 = inlined_call_operand.hbm [shape: f32[96,128], index: 3, kind: input, shape index: {}]   ;;  %s733_s4 = inlined_call_operand.vmem [shape: f32[1,128], index: 4, kind: input, shape index: {}]   ;;  %s734_s5 = inlined_call_operand.hbm [shape: f32[32,128], index: 5, kind: output, shape index: {}]  }
   0x1   :  { %11 = vsyncpa [#allocation6], 0 }
   0x2   :  { %12 = vsyncpa [#allocation4], 0  ;;  %s19_s20 = sshll.u32 %s730_s1, 4  ;;  %s547_s21 = smov [#allocation2]   ;;  %s20_s20 = int_to_ptr.hbm [resolvable:$true] %s19_s20 }
   0x3   :  { %s21_s22 = sshll.u32 %s547_s21, 4  ;;  %s34_s25 = sshll.u32 %s732_s3, 4  ;;  %s22_s22 = int_to_ptr.vmem [resolvable:$true] %s21_s22  ;;  %s35_s25 = int_to_ptr.hbm [resolvable:$true] %s34_s25 }
   0x4   :  { %s548_s26 = smov 128   ;;  %s549_s27 = smov 8  }
   0x5   :  { %27 = dma.hbm_to_vmem [thread:$0]  %s20_s20, 1152, %s22_s22, [#allocation3], %s548_s26, %s548_s26, %s549_s27  }
   0x6   :  { %s550_s28 = smov [#allocation5]  }
   0x7   :  { %s36_s29 = sshll.u32 %s550_s28, 4  ;;  %s37_s29 = int_to_ptr.vmem [resolvable:$true] %s36_s29 }
   0x8   :  { %42 = dma.hbm_to_vmem [thread:$0]  %s35_s25, 1536, %s37_s29, [#allocation6], %s548_s26, %s548_s26, %s549_s27  }
   0x9   :  { %541 = dma.done.wait [#allocation3], 1152  }
   0xa   :  { %542 = vsyncadd [#allocation3], 4294966144 }
   0xb   :  { %543 = dma.done.wait [#allocation6], 1536  }
   0xc   :  { %544 = vsyncadd [#allocation6], 4294965760  ;;  %v57_v0 = vlaneseq  ;;  %vm136_vm0 = vcmask 1044480   ;;  %v216_v3 = vld [vmem:[#allocation2 + $0x40] sm:$0x1f]  ;;  %v215_v4 = vld [vmem:[#allocation2 + $0x38] sm:$0xff] }
   0xd   :  { %v122_v5 = vld [vmem:[#allocation2 + $0x28] sm:$0x1f]  ;;  %439 = vmatpush.msk.msra.mxu2 %vm136_vm0, %v216_v3  ;;  %v118_v7 = vld [vmem:[#allocation2 + $0x10] sm:$0x1f]  ;;  %v53_v9 = vld [vmem:[%s729_s0] sm:$0xff]  ;;  %vm123_vm2 = vcmask 171008  }
   0xe   :  { %v596_v1 = vshrl.u32 %v57_v0, 7  ;;  %429 = vmatpush.msk.msra.mxu0 %vm136_vm0, %v122_v5  ;;  %v214_v8 = vld [vmem:[#allocation2 + $0x30] sm:$0xff]  ;;  %434 = vmatpush.msk.msra.mxu1 %vm136_vm0, %v118_v7  ;;  %v54_v10 = vld [vmem:[%s729_s0 + $0x8] sm:$0xff]  ;;  %v95_v11 = vrot.slane %v53_v9, 1  ;;  %v121_v12 = vld [vmem:[#allocation2 + $0x20] sm:$0xff]  ;;  %v74_v14 = vrot.slane %v53_v9, 7 }
   0xf   :  { %v117_v13 = vld [vmem:[#allocation2 + $0x8] sm:$0xff]  ;;  %246 = vmatpush.msra.mxu2 %v215_v4  ;;  %v96_v15 = vrot.slane %v54_v10, 1  ;;  %v120_v16 = vld [vmem:[#allocation2 + $0x18] sm:$0xff]  ;;  %v116_v17 = vld [vmem:[#allocation2] sm:$0xff]  ;;  %v75_v29 = vrot.slane %v54_v10, 7  ;;  %s551_s12 = smov 32  }
  0x10   :  { %v62_v2 = vand.u32 15, %v596_v1  ;;  %v59_v6 = vadd.s32 8, %v596_v1  ;;  %vm99_vm1 = vcmp.lt.s32.totalorder %v596_v1, 7  ;;  %154 = vmatpush.msra.mxu0 %v121_v12  ;;  %v56_v18 = vld [vmem:[%s729_s0 + $0x18] sm:$0xff]  ;;  %vm78_vm3 = vcmp.lt.s32.totalorder %v596_v1, 1  ;;  %198 = vmatpush.msra.mxu1 %v117_v13  ;;  %v55_v21 = vld [vmem:[%s729_s0 + $0x10] sm:$0xff] }
  0x11   :  { %v77_v20 = vrot.slane %v56_v18, 7  ;;  %247 = vmatpush.msra.mxu2 %v214_v8  ;;  %v102_v23 = vsel %vm99_vm1, %v95_v11, %v96_v15  ;;  %v97_v24 = vrot.slane %v55_v21, 1  ;;  %v60_v30 = vadd.s32 16, %v596_v1  ;;  %v467_v51 = vld [vmem:[%s731_s2] ss:$0 sm:$0xff]  ;;  %s552_s2 = smov 64  }
  0x12   :  { %vm611_vm4 = vcmp.eq.s32.totalorder %v62_v2, 0  ;;  %v63_v22 = vand.u32 15, %v59_v6  ;;  %155 = vmatpush.msra.mxu0 %v120_v16  ;;  %440 = vmatmul.msk.f32.vlgmr.msra.gmra.mxu2 %vm123_vm2, %v102_v23  ;;  %v81_v32 = vsel %vm78_vm3, %v74_v14, %v75_v29  ;;  %v76_v34 = vrot.slane %v55_v21, 7  ;;  %v354_v58 = vld [vmem:[#allocation5 + $0x58] sm:$0xff]  ;;  %v343_v42 = vld [vmem:[#allocation5] sm:$0xff]  ;;  %s553_s15 = smov [#allocation7]  }
  0x13   :  { %199 = vmatpush.msra.mxu1 %v116_v17  ;;  %v82_v25 = vsel %vm78_vm3, %v77_v20, %v74_v14  ;;  %430 = vmatmul.msk.f32.vlgmr.msra.gmra.mxu0 %vm123_vm2, %v53_v9  ;;  %v101_v28 = vsel %vm99_vm1, %v96_v15, %v97_v24  ;;  %v64_v33 = vand.u32 15, %v60_v30  ;;  %v98_v35 = vrot.slane %v56_v18, 1  ;;  %s413_s16 = sshll.u32 %s553_s15, 4  ;;  %s415_s19 = sshll.u32 %s734_s5, 4  ;;  %s414_s16 = int_to_ptr.vmem [resolvable:$true] %s413_s16  ;;  %s416_s19 = int_to_ptr.hbm [resolvable:$true] %s415_s19 }
  0x14   :  { %v91_v26 = vsel %vm611_vm4, 0.0, %v82_v25  ;;  %vm627_vm5 = vcmp.eq.s32.totalorder %v63_v22, 15  ;;  %v61_v36 = vadd.s32 24, %v596_v1  ;;  %v80_v38 = vsel %vm78_vm3, %v75_v29, %v76_v34  ;;  %448 = vmatpush.msra.mxu3 %v354_v58  ;;  %376 = vmatpush.msrb.mxu0 %v354_v58  ;;  %v346_v1 = vld [vmem:[#allocation5 + $0x18] sm:$0xff] }
  0x15   :  { %435 = vmatmul.msk.f32.vlgmr.msra.gmra.mxu1 %vm123_vm2, %v91_v26  ;;  %v113_v31 = vsel %vm627_vm5, 0.0, %v101_v28  ;;  %vm642_vm6 = vcmp.eq.s32.totalorder %v64_v33, 0  ;;  %v100_v39 = vsel %vm99_vm1, %v97_v24, %v98_v35  ;;  %v103_v43 = vsel %vm99_vm1, %v98_v35, %v95_v11  ;;  %v352_v33 = vld [vmem:[#allocation5 + $0x48] sm:$0xff]  ;;  %v350_v35 = vld [vmem:[#allocation5 + $0x38] sm:$0xff] }
  0x16   :  { %v65_v40 = vand.u32 15, %v61_v36  ;;  %v93_v41 = vsel %vm642_vm6, 0.0, %v80_v38  ;;  %v79_v45 = vsel %vm78_vm3, %v76_v34, %v77_v20  ;;  %v351_v34 = vld [vmem:[#allocation5 + $0x40] sm:$0xff]  ;;  %v349_v36 = vld [vmem:[#allocation5 + $0x30] sm:$0xff]  ;;  %v348_v38 = vld [vmem:[#allocation5 + $0x28] sm:$0xff]  ;;  %vm333_vm8 = vcmask 261120  }
  0x17   :  { %vm359_vm9 = vcmask 785408   ;;  %vm338_vm10 = vcmask 523264  }
  0x18   :  { %vm655_vm7 = vcmp.eq.s32.totalorder %v65_v40, 15  ;;  %v345_v40 = vld [vmem:[#allocation5 + $0x10] sm:$0xff] }
  0x19   :  { %v115_v44 = vsel %vm655_vm7, 0.0, %v103_v43 }
  0x1a   :  { %441 = vmatmul.msk.f32.gmra.mxu2 %vm123_vm2, %v113_v31 }
  0x1b   :  { %431 = vmatmul.msk.f32.gmra.mxu0 %vm123_vm2, %v54_v10 }
  0x1d   :  { %436 = vmatmul.msk.f32.gmra.mxu1 %vm123_vm2, %v81_v32  ;;  %v353_v32 = vld [vmem:[#allocation5 + $0x50] sm:$0xff] }
  0x1e   :  { %449 = vmatpush.msra.mxu3 %v353_v32  ;;  %377 = vmatpush.msrb.mxu0 %v353_v32 }
  0x20   :  { %450 = vmatpush.msra.mxu3 %v352_v33  ;;  %378 = vmatpush.msrb.mxu0 %v352_v33 }
  0x22   :  { %442 = vmatmul.msk.f32.gmra.mxu2 %vm123_vm2, %v100_v39  ;;  %451 = vmatpush.msra.mxu3 %v351_v34  ;;  %v347_v39 = vld [vmem:[#allocation5 + $0x20] sm:$0xff] }
  0x23   :  { %432 = vmatmul.msk.f32.gmra.mxu0 %vm123_vm2, %v55_v21 }
  0x24   :  { %379 = vmatpush.msrb.mxu0 %v351_v34  ;;  %452 = vmatpush.msra.mxu3 %v350_v35 }
  0x25   :  { %437 = vmatmul.msk.f32.gmra.mxu1 %vm123_vm2, %v93_v41  ;;  %v344_v41 = vld [vmem:[#allocation5 + $0x8] sm:$0xff] }
  0x26   :  { %380 = vmatpush.msrb.mxu0 %v350_v35  ;;  %453 = vmatpush.msra.mxu3 %v349_v36 }
  0x28   :  { %381 = vmatpush.msrb.mxu0 %v349_v36  ;;  %454 = vmatpush.msra.mxu3 %v348_v38 }
  0x2a   :  { %443 = vmatmul.msk.f32.gmra.mxu2 %vm123_vm2, %v115_v44  ;;  %382 = vmatpush.msrb.mxu0 %v348_v38 }
  0x2b   :  { %433 = vmatmul.msk.f32.gmra.mxu0 %vm123_vm2, %v56_v18  ;;  %455 = vmatpush.msra.mxu3 %v347_v39 }
  0x2c   :  { %383 = vmatpush.msrb.mxu0 %v347_v39 }
  0x2d   :  { %438 = vmatmul.msk.f32.gmra.mxu1 %vm123_vm2, %v79_v45  ;;  %456 = vmatpush.msra.mxu3 %v346_v1 }
  0x2e   :  { %384 = vmatpush.msrb.mxu0 %v346_v1 }
  0x2f   :  { %457 = vmatpush.msra.mxu3 %v345_v40 }
  0x30   :  { %385 = vmatpush.msrb.mxu0 %v345_v40 }
  0x31   :  { %458 = vmatpush.msra.mxu3 %v344_v41 }
  0x32   :  { %386 = vmatpush.msrb.mxu0 %v344_v41 }
  0x33   :  { %459 = vmatpush.msra.mxu3 %v343_v42 }
  0x34   :  { %387 = vmatpush.msrb.mxu0 %v343_v42 }
  0x90   :  { %v157_v46 = vpop.f32.mrf.mxu0 }
  0x92   :  { %v201_v47 = vpop.f32.mrf.mxu1 }
  0x93   :  { %v202_v48 = vadd.f32 %v201_v47, %v157_v46 }
  0x95   :  { %v249_v49 = vpop.f32.mrf.mxu2 }
  0x96   :  { %v261_v50 = vadd.f32 %v249_v49, %v202_v48 }
  0x98   :  { %v160_v52 = vpop.f32.mrf.mxu0  ;;  %v269_v55 = vadd.f32 %v467_v51, %v261_v50 }
  0x9a   :  { %v204_v53 = vpop.f32.mrf.mxu1  ;;  %v273_v59 = vmax.f32 %v269_v55, 0.0 }
  0x9b   :  { %v205_v54 = vadd.f32 %v204_v53, %v160_v52 }
  0x9c   :  { %v277_v2 = vrot.slane %v273_v59, 7  ;;  %v289_v26 = vrot.slane %v273_v59, 1 }
  0x9d   :  { %v252_v56 = vpop.f32.mrf.mxu2 }
  0x9e   :  { %v262_v57 = vadd.f32 %v252_v56, %v205_v54 }
  0xa0   :  { %v270_v60 = vadd.f32 %v467_v51, %v262_v57  ;;  %v163_v61 = vpop.f32.mrf.mxu0 }
  0xa2   :  { %v207_v62 = vpop.f32.mrf.mxu1  ;;  %v274_v63 = vmax.f32 %v270_v60, 0.0  ;;  %v468_v60 = vld [vmem:[%s733_s4] ss:$0 sm:$0xff] }
  0xa3   :  { %v208_v0 = vadd.f32 %v207_v62, %v163_v61 }
  0xa4   :  { %v278_v3 = vrot.slane %v274_v63, 7  ;;  %307 = vrot.lane.b32.xlu0 %v274_v63, %s551_s12  ;;  %v290_v13 = vrot.slane %v274_v63, 1 }
  0xa5   :  { %v255_v4 = vpop.f32.mrf.mxu2 }
  0xa6   :  { %v263_v5 = vadd.f32 %v255_v4, %v208_v0  ;;  %v674_v6 = vsel %vm78_vm3, %v277_v2, %v278_v3  ;;  %v295_v31 = vsel %vm99_vm1, %v289_v26, %v290_v13 }
  0xa8   :  { %v271_v7 = vadd.f32 %v467_v51, %v263_v5  ;;  %v166_v8 = vpop.f32.mrf.mxu0 }
  0xaa   :  { %v210_v9 = vpop.f32.mrf.mxu1  ;;  %v275_v10 = vmax.f32 %v271_v7, 0.0 }
  0xab   :  { %v211_v11 = vadd.f32 %v210_v9, %v166_v8 }
  0xac   :  { %v279_v12 = vrot.slane %v275_v10, 7  ;;  %309 = vrot.lane.b32.xlu1 %v275_v10, %s551_s12  ;;  %v291_v14 = vrot.slane %v275_v10, 1 }
  0xad   :  { %v258_v15 = vpop.f32.mrf.mxu2 }
  0xae   :  { %v264_v16 = vadd.f32 %v258_v15, %v211_v11  ;;  %v294_v17 = vsel %vm99_vm1, %v290_v13, %v291_v14  ;;  %v681_v18 = vsel %vm78_vm3, %v278_v3, %v279_v12 }
  0xaf   :  { %v298_v20 = vsel %vm627_vm5, 0.0, %v294_v17  ;;  %v287_v49 = vsel %vm642_vm6, 0.0, %v681_v18 }
  0xb0   :  { %v272_v21 = vadd.f32 %v467_v51, %v264_v16  ;;  %323 = vrot.lane.b32.xlu0 %v298_v20, %s552_s2 }
  0xb2   :  { %v276_v22 = vmax.f32 %v272_v21, 0.0 }
  0xb4   :  { %v280_v23 = vrot.slane %v276_v22, 7  ;;  %311 = vrot.lane.b32.xlu2 %v276_v22, %s551_s12  ;;  %v292_v24 = vrot.slane %v276_v22, 1 }
  0xb6   :  { %v293_v25 = vsel %vm99_vm1, %v291_v14, %v292_v24  ;;  %v690_v28 = vsel %vm78_vm3, %v279_v12, %v280_v23  ;;  %v284_v27 = vsel %vm78_vm3, %v280_v23, %v277_v2  ;;  %v296_v29 = vsel %vm99_vm1, %v292_v24, %v289_v26 }
  0xb7   :  { %325 = vrot.lane.b32.xlu1 %v293_v25, %s552_s2  ;;  %v300_v30 = vsel %vm655_vm7, 0.0, %v296_v29  ;;  %v285_v55 = vsel %vm611_vm4, 0.0, %v284_v27 }
  0xb8   :  { %305 = vrot.lane.b32.xlu0 %v273_v59, %s551_s12 }
  0xbc   :  { %327 = vrot.lane.b32.xlu2 %v300_v30, %s552_s2 }
  0xbf   :  { %321 = vrot.lane.b32.xlu1 %v295_v31, %s552_s2 }
 0x10e   :  { %v312_v48 = vpop.permute.xlu2 %311 }
 0x10f   :  { %v337_v58 = vsel %vm333_vm8, %v690_v28, %v312_v48 }
 0x116   :  { %v308_v43 = vpop.permute.xlu0 %307  ;;  %v328_v54 = vpop.permute.xlu2 %327 }
 0x117   :  { %v335_v45 = vsel %vm333_vm8, %v674_v6, %v308_v43  ;;  %v342_v59 = vsel %vm338_vm10, %v337_v58, %v328_v54 }
 0x11e   :  { %v310_v44 = vpop.permute.xlu1 %309 }
 0x11f   :  { %v336_v50 = vsel %vm333_vm8, %v287_v49, %v310_v44 }
 0x122   :  { %v324_v46 = vpop.permute.xlu0 %323 }
 0x123   :  { %v340_v47 = vsel %vm338_vm10, %v335_v45, %v324_v46 }
 0x124   :  { %445 = vmatmul.msk.f32.vlgmr.msra.gmra.mxu3 %vm359_vm9, %v340_v47 }
 0x129   :  { %v326_v51 = vpop.permute.xlu1 %325 }
 0x12a   :  { %v341_v52 = vsel %vm338_vm10, %v336_v50, %v326_v51  ;;  %v306_v53 = vpop.permute.xlu0 %305 }
 0x12b   :  { %v334_v56 = vsel %vm333_vm8, %v285_v55, %v306_v53 }
 0x12c   :  { %446 = vmatmul.msk.f32.gmra.mxu3 %vm359_vm9, %v341_v52 }
 0x131   :  { %v322_v57 = vpop.permute.xlu1 %321 }
 0x132   :  { %v339_v37 = vsel %vm338_vm10, %v334_v56, %v322_v57 }
 0x133   :  { %444 = vmatmul.msk.f32.vlgmr.msrb.gmra.mxu0 %vm359_vm9, %v339_v37 }
 0x134   :  { %447 = vmatmul.msk.f32.gmra.mxu3 %vm359_vm9, %v342_v59 }
 0x1a7   :  { %v392_v19 = vpop.f32.mrf.mxu3 }
 0x1a8   :  { %v393_v61 = vadd.f32 %v468_v60, %v392_v19 }
 0x1aa   :  { %v402_v62 = vmax.f32 %v393_v61, 0.0 }
 0x1ac   :  { %406 = vst [vmem:[#allocation7 + $0x8] sm:$0xff] %v402_v62 }
 0x1af   :  { %v395_v63 = vpop.f32.mrf.mxu3 }
 0x1b0   :  { %v396_v0 = vadd.f32 %v468_v60, %v395_v63  ;;  %v389_v2 = vpop.f32.mrf.mxu0 }
 0x1b1   :  { %v390_v3 = vadd.f32 %v468_v60, %v389_v2 }
 0x1b2   :  { %v403_v4 = vmax.f32 %v396_v0, 0.0 }
 0x1b3   :  { %v401_v5 = vmax.f32 %v390_v3, 0.0 }
 0x1b4   :  { %407 = vst [vmem:[#allocation7 + $0x10] sm:$0xff] %v403_v4 }
 0x1b5   :  { %405 = vst [vmem:[#allocation7] sm:$0xff] %v401_v5 }
 0x1b7   :  { %v398_v6 = vpop.f32.mrf.mxu3 }
 0x1b8   :  { %v399_v7 = vadd.f32 %v468_v60, %v398_v6 }
 0x1ba   :  { %v404_v8 = vmax.f32 %v399_v7, 0.0 }
 0x1bc   :  { %408 = vst [vmem:[#allocation7 + $0x18] sm:$0xff] %v404_v8 }
 0x1bd   :  { %421 = dma.vmem_to_hbm [thread:$0]  %s414_s16, 512, %s416_s19, [#allocation4], %s548_s26, %s548_s26, %s549_s27  }
 0x1be   :  { %545 = dma.done.wait [#allocation4], 512  }
 0x1bf   :  { %546 = vsyncadd [#allocation4], 4294966784 }
 0x1c0   :  { %426 = vsyncpa [#allocation3], 1 }
 0x1c1   :  { %427 = vsyncpa [#allocation6], 1 }
 0x1c2   :  { %428 = vsyncpa [#allocation4], 1 }

</bundles_post_ra>
